<compile_context>
chip_gen: v7x
topology: tpu7x:2x2x1
jax: 0.10.0
libtpu: 0.0.40
codegen_flags: <defaults>
</compile_context>

<pallas_src>
import functools

import jax
import jax.numpy as jnp
from jax.experimental import pallas as pl
from jax.experimental.pallas import tpu as pltpu


def _rmsnorm_kernel(x_ref, scale_ref, o_ref, *, eps, inv_dim):
    # x_ref:     (tile_rows, dim_padded)
    # scale_ref: (1, dim_padded)          -- constant block, resident across steps
    # o_ref:     (tile_rows, dim_padded)
    #
    # Pass 1: row sum of squares.  Cast per-read; padded columns are zeros so
    # they do not perturb sumsq.  inv_dim uses the ORIGINAL (unpadded) dim.
    xf = x_ref[...].astype(jnp.float32)
    sumsq = jnp.sum(xf * xf, axis=-1, keepdims=True)         # (tile_rows, 1)
    rms = jnp.sqrt(sumsq * inv_dim)                           # (tile_rows, 1)
    # Exact per-row reciprocal on a (tile_rows, 1) column, then two broadcast
    # multiplies on the VPU (instead of a full-tile divide).
    inv = pl.reciprocal(rms + eps, approx=False)              # (tile_rows, 1)

    # Pass 2: re-read the VMEM block (fresh load -> no full-tile f32 temp kept
    # live across the reduction; VMEM reloads are cheap and hidden under DMA).
    scale = scale_ref[...].astype(jnp.float32)                # (1, dim_padded)
    x2 = x_ref[...].astype(jnp.float32)
    o_ref[...] = ((x2 * inv) * scale).astype(o_ref.dtype)


def _chip_params():
    """Per-generation tiling policy (conservative fallback if detection fails)."""
    kind = ""
    try:
        kind = jax.devices()[0].device_kind.lower()
    except Exception:
        pass
    is_v7x = ("v7" in kind) or ("tpu7" in kind) or kind.endswith("7x")
    if is_v7x:
        # 64 MiB physical VMEM, 2 TensorCores sharing HBM.
        return {"max_block_bytes": 4 << 20, "num_cores": 2}
    # v5e / v6e: 128 MiB physical VMEM, 1 TensorCore.
    return {"max_block_bytes": 8 << 20, "num_cores": 1}


def rmsnorm(x, scale, eps=1e-8):
    """x: (..., dim) array, scale: (dim,) parameter. Matches the torch forward."""
    orig_shape = x.shape
    dim = orig_shape[-1]
    rows = 1
    for s in orig_shape[:-1]:
        rows *= s

    if rows == 0 or dim == 0:
        # Degenerate empty input: nothing to normalize.
        return x

    params = _chip_params()
    max_block_bytes = params["max_block_bytes"]
    num_cores = params["num_cores"]

    # --- Lane-dense padding of the feature dim to a multiple of 128. ---------
    dim_p = ((dim + 127) // 128) * 128
    x2d = x.reshape(rows, dim)
    scale2d = scale.reshape(1, dim)
    if dim_p != dim:
        x2d = jnp.pad(x2d, ((0, 0), (0, dim_p - dim)))
        scale2d = jnp.pad(scale2d, ((0, 0), (0, dim_p - dim)))

    itemsize = jnp.dtype(x.dtype).itemsize
    # Sublane packing: f32 -> 8, bf16 -> 16, int8/fp8 -> 32.
    sublane = max(8, 32 // itemsize)
    rows_rounded = ((rows + sublane - 1) // sublane) * sublane

    # --- Tile sizing: purely by byte budget (no fixed row cap). --------------
    bytes_per_row = dim_p * itemsize
    tile_rows = max_block_bytes // max(1, bytes_per_row)
    tile_rows = max(sublane, (tile_rows // sublane) * sublane)
    tile_rows = min(tile_rows, rows_rounded)

    # On multi-TC chips (v7x) make sure the parallel grid axis has >= 2 steps
    # so both TensorCores share the HBM bandwidth.
    if num_cores >= 2 and rows_rounded >= 2 * sublane:
        half = -(-rows // 2)                                   # ceil(rows / 2)
        half = ((half + sublane - 1) // sublane) * sublane
        tile_rows = min(tile_rows, half)

    grid = pl.cdiv(rows, tile_rows)  # Pallas masks the partial trailing block.

    # --- VMEM budget: double-buffered in + out (input dtype) plus f32 temps. -
    block_bytes_in = tile_rows * dim_p * itemsize
    block_bytes_f32 = tile_rows * dim_p * 4
    scale_bytes = dim_p * 4
    vmem_limit = int(4 * block_bytes_in + 2 * block_bytes_f32
                     + scale_bytes + (4 << 20))

    kernel = functools.partial(_rmsnorm_kernel, eps=eps, inv_dim=1.0 / dim)

    out2d = pl.pallas_call(
        kernel,
        out_shape=jax.ShapeDtypeStruct((rows, dim_p), x.dtype),
        grid_spec=pltpu.PrefetchScalarGridSpec(
            num_scalar_prefetch=0,
            grid=(grid,),
            in_specs=[
                pl.BlockSpec((tile_rows, dim_p), lambda i: (i, 0)),
                pl.BlockSpec((1, dim_p), lambda i: (0, 0)),
            ],
            out_specs=pl.BlockSpec((tile_rows, dim_p), lambda i: (i, 0)),
        ),
        compiler_params=pltpu.CompilerParams(
            dimension_semantics=("parallel",),
            vmem_limit_bytes=vmem_limit,
        ),
    )(x2d, scale2d)

    if dim_p != dim:
        out2d = out2d[:, :dim]
    return out2d.reshape(orig_shape)


def rmsnorm_ref(x, scale, eps=1e-8):
    """Pure-JAX reference matching the PyTorch forward exactly."""
    xf = x.astype(jnp.float32)
    rms = jnp.linalg.norm(xf, axis=-1, keepdims=True) * (x.shape[-1] ** -0.5)
    return (scale.astype(jnp.float32) * xf / (rms + eps)).astype(x.dtype)


if __name__ == "__main__":
    key = jax.random.PRNGKey(0)
    batch, seq, hidden = 2, 8, 32

    kx, _ = jax.random.split(key)
    x = jax.random.normal(kx, (batch, seq, hidden), dtype=jnp.float32)
    # Deterministic parameter init: module initializes scale = ones(dim).
    scale = jnp.ones((hidden,), dtype=jnp.float32)

    out = rmsnorm(x, scale, eps=1e-8)
    out = jax.block_until_ready(out)

    ref = rmsnorm_ref(x, scale, eps=1e-8)
    assert out.shape == x.shape
    assert jnp.allclose(out, ref, atol=1e-5, rtol=1e-5), (
        f"max abs err {jnp.max(jnp.abs(out - ref))}"
    )
    print("KERNEL_OK")
</pallas_src>

<mosaic_0001>
module attributes {stable_mosaic.version = 11 : i64} {
  func.func @_rmsnorm_kernel(%arg0: i32, %arg1: memref<16x128xf32, #tpu.memory_space<vmem>>, %arg2: memref<1x128xf32, #tpu.memory_space<vmem>>, %arg3: memref<16x128xf32, #tpu.memory_space<vmem>>) attributes {dimension_semantics = [#tpu.dimension_semantics<parallel>], iteration_bounds = array<i64: 1>, scalar_prefetch = 0 : i64, scratch_operands = 0 : i64, tpu.core_type = #tpu.core_type<tc>, window_params = [{transform_indices = @transform_0, window_bounds = array<i64: 16, 128>}, {pipeline_mode = #tpu.pipeline_mode<synchronous>, transform_indices = @transform_1, window_bounds = array<i64: 1, 128>}, {transform_indices = @transform_2, window_bounds = array<i64: 16, 128>}]} {
    %c0 = arith.constant 0 : index
    %c0_0 = arith.constant 0 : index
    %0 = vector.load %arg1[%c0, %c0_0] : memref<16x128xf32, #tpu.memory_space<vmem>>, vector<16x128xf32>
    %1 = arith.mulf %0, %0 : vector<16x128xf32>
    %cst = arith.constant dense<0.000000e+00> : vector<16xf32>
    %2 = vector.multi_reduction <add>, %1, %cst [1] : vector<16x128xf32> to vector<16xf32>
    %3 = vector.shape_cast %2 : vector<16xf32> to vector<16x1xf32>
    %cst_1 = arith.constant 3.125000e-02 : f32
    %4 = vector.broadcast %cst_1 : f32 to vector<16x1xf32>
    %5 = arith.mulf %3, %4 : vector<16x1xf32>
    %6 = math.sqrt %5 : vector<16x1xf32>
    %cst_2 = arith.constant 9.99999993E-9 : f32
    %7 = vector.broadcast %cst_2 : f32 to vector<16x1xf32>
    %8 = arith.addf %6, %7 : vector<16x1xf32>
    %9 = tpu.reciprocal %8 : vector<16x1xf32> -> vector<16x1xf32>
    %c0_3 = arith.constant 0 : index
    %c0_4 = arith.constant 0 : index
    %10 = vector.load %arg2[%c0_3, %c0_4] : memref<1x128xf32, #tpu.memory_space<vmem>>, vector<1x128xf32>
    %c0_5 = arith.constant 0 : index
    %c0_6 = arith.constant 0 : index
    %11 = vector.load %arg1[%c0_5, %c0_6] : memref<16x128xf32, #tpu.memory_space<vmem>>, vector<16x128xf32>
    %12 = vector.broadcast %9 : vector<16x1xf32> to vector<16x128xf32>
    %13 = arith.mulf %11, %12 : vector<16x128xf32>
    %14 = vector.broadcast %10 : vector<1x128xf32> to vector<16x128xf32>
    %15 = arith.mulf %13, %14 : vector<16x128xf32>
    %c0_7 = arith.constant 0 : index
    %c0_8 = arith.constant 0 : index
    %16 = vector.load %arg3[%c0_7, %c0_8] : memref<16x128xf32, #tpu.memory_space<vmem>>, vector<16x128xf32>
    tpu.vector_store %arg3[%c0_7, %c0_8], %15 {strides = array<i32>} : memref<16x128xf32, #tpu.memory_space<vmem>>, vector<16x128xf32>,
    return
  }
  func.func @transform_0(%arg0: i32) -> (i32, i32) {
    %c0_i32 = arith.constant 0 : i32
    %c0_i32_0 = arith.constant 0 : i32
    return %arg0, %c0_i32 : i32, i32
  }
  func.func @transform_1(%arg0: i32) -> (i32, i32) {
    %c0_i32 = arith.constant 0 : i32
    %c0_i32_0 = arith.constant 0 : i32
    %c0_i32_1 = arith.constant 0 : i32
    return %c0_i32, %c0_i32_0 : i32, i32
  }
  func.func @transform_2(%arg0: i32) -> (i32, i32) {
    %c0_i32 = arith.constant 0 : i32
    %c0_i32_0 = arith.constant 0 : i32
    return %arg0, %c0_i32 : i32, i32
  }
}

</mosaic_0001>

<bundles_post_ra>
// kernel: tpu_custom_call.1
= control target key start
LH: loop header
LB: loop body
LE: loop exit
PB: predicated region body
PF: predicated region fallthrough
CT: control target
= control target key end

     0   :  { %7 = vsyncpa [#allocation3], 0  ;;  %s197_s0 = inlined_call_operand.hbm [shape: f32[16,128], index: 0, kind: input, shape index: {}]   ;;  %s198_s1 = inlined_call_operand.vmem [shape: f32[1,128], index: 1, kind: input, shape index: {}]   ;;  %s199_s2 = inlined_call_operand.hbm [shape: f32[16,128], index: 2, kind: output, shape index: {}]  }
   0x1   :  { %8 = vsyncpa [#allocation4], 0  ;;  %s145_s9 = smov [#allocation2]   ;;  %s97_s13 = scalar_lea.hbm %s197_s0, 256 }
   0x2   :  { %s14_s10 = sshll.u32 %s145_s9, 4  ;;  %p98_p0 = scmp.ne.s32.totalorder %s197_s0, %s97_s13  ;;  %s15_s10 = int_to_ptr.vmem [resolvable:$true] %s14_s10 }
   0x3   :  { %p101_p1 = scmp.lt.u32.totalorder %s97_s13, %s197_s0 }
   0x5   :  { %p103_p2 = pnand %p101_p1, %p98_p0 }
   0x7   :  { %106 = shalt.err (!%p103_p2)
}
   0x8   :  { %s107_s18 = scalar_lea.vmem %s15_s10, 256  ;;  %p112_p4 = scmp.lt.s32.totalorder %s15_s10, %s15_s10 }
   0x9   :  { %p108_p3 = scmp.ne.s32.totalorder %s15_s10, %s107_s18  ;;  %p113_p5 = scmp.lt.s32.totalorder %s107_s18, %s107_s18 }
   0xb   :  { %p114_p6 = por %p113_p5, %p112_p4 }
   0xd   :  { %p115_p7 = pnand %p114_p6, %p108_p3 }
   0xf   :  { %118 = shalt.err (!%p115_p7)
}
  0x10   :  { %s146_s19 = smov 128   ;;  %s147_s20 = smov 8  }
  0x11   :  { %20 = dma.hbm_to_vmem [thread:$0]  %s197_s0, 256, %s15_s10, [#allocation3], %s146_s19, %s146_s19, %s147_s20  }
  0x12   :  { %141 = dma.done.wait [#allocation3], 256  }
  0x13   :  { %142 = vsyncadd [#allocation3], 4294967040  ;;  %v26_v0 = vld [vmem:[#allocation2] sm:$0xff]  ;;  %v27_v1 = vld [vmem:[#allocation2 + $0x8] sm:$0xff]  ;;  %s148_s24 = smov [#allocation5]  }
  0x14   :  { %v28_v2 = vmul.f32 %v26_v0, %v26_v0  ;;  %v29_v3 = vmul.f32 %v27_v1, %v27_v1  ;;  %v84_v21 = vld [vmem:[%s198_s1] ss:$0 sm:$0xff]  ;;  %s72_s25 = sshll.u32 %s148_s24, 4  ;;  %s73_s25 = int_to_ptr.vmem [resolvable:$true] %s72_s25 }
  0x15   :  { %s119_s26 = scalar_lea.vmem %s73_s25, 256  ;;  %p124_p9 = scmp.lt.s32.totalorder %s73_s25, %s73_s25 }
  0x16   :  { %30 = vadd.xlane.f32.xlu0 %v28_v2  ;;  %p120_p8 = scmp.ne.s32.totalorder %s73_s25, %s119_s26  ;;  %p125_p10 = scmp.lt.s32.totalorder %s119_s26, %s119_s26 }
  0x18   :  { %p126_p11 = por %p125_p10, %p124_p9 }
  0x1a   :  { %32 = vadd.xlane.f32.xlu0 %v29_v3  ;;  %p127_p12 = pnand %p126_p11, %p120_p8 }
  0xa3   :  { %v31_v4 = vpop.xlane.xlu0 %30 }
  0xa4   :  { %v34_v5 = vmul.f32 0.03125, %v31_v4 }
  0xa6   :  { %89 = vrsqrt.f32 %v34_v5  ;;  %vm38_vm0 = vcmp.eq.f32.partialorder %v34_v5, inf  ;;  %v41_v10 = vand.u32 2147483648, %v34_v5  ;;  %vm40_vm1 = vcmp.eq.f32.partialorder %v34_v5, 0.0 }
  0xa7   :  { %v33_v6 = vpop.xlane.xlu0 %32 }
  0xa8   :  { %v35_v7 = vmul.f32 0.03125, %v33_v6 }
  0xaa   :  { %91 = vrsqrt.f32 %v35_v7  ;;  %vm45_vm2 = vcmp.eq.f32.partialorder %v35_v7, inf  ;;  %v48_v16 = vand.u32 2147483648, %v35_v7  ;;  %vm47_vm3 = vcmp.eq.f32.partialorder %v35_v7, 0.0 }
  0xb0   :  { %v90_v8 = vpop.eup %89 }
  0xb1   :  { %v37_v9 = vmul.f32 %v90_v8, %v34_v5 }
  0xb3   :  { %v39_v11 = vsel %vm38_vm0, %v34_v5, %v37_v9 }
  0xb4   :  { %v92_v12 = vpop.eup %91  ;;  %v42_v13 = vsel %vm40_vm1, %v41_v10, %v39_v11 }
  0xb5   :  { %v44_v14 = vmul.f32 %v92_v12, %v35_v7  ;;  %v50_v15 = vadd.f32 1e-08, %v42_v13 }
  0xb7   :  { %v46_v17 = vsel %vm45_vm2, %v35_v7, %v44_v14  ;;  %93 = vrcp.f32 %v50_v15 }
  0xb8   :  { %v49_v18 = vsel %vm47_vm3, %v48_v16, %v46_v17 }
  0xb9   :  { %v51_v19 = vadd.f32 1e-08, %v49_v18 }
  0xbb   :  { %95 = vrcp.f32 %v51_v19 }
  0xc1   :  { %v94_v20 = vpop.eup %93 }
  0xc2   :  { %v55_v22 = vmul.f32 %v94_v20, %v26_v0 }
  0xc4   :  { %v63_v23 = vmul.f32 %v84_v21, %v55_v22 }
  0xc5   :  { %v96_v24 = vpop.eup %95 }
  0xc6   :  { %v56_v25 = vmul.f32 %v96_v24, %v27_v1  ;;  %65 = vst [vmem:[#allocation5] sm:$0xff] %v63_v23 }
  0xc8   :  { %v64_v26 = vmul.f32 %v84_v21, %v56_v25 }
  0xca   :  { %66 = vst [vmem:[#allocation5 + $0x8] sm:$0xff] %v64_v26 }
  0xcb   :  { %130 = shalt.err (!%p127_p12)
}
  0xcc   :  { %s131_s1 = scalar_lea.hbm %s199_s2, 256 }
  0xcd   :  { %p132_p13 = scmp.ne.s32.totalorder %s199_s2, %s131_s1  ;;  %p135_p0 = scmp.lt.u32.totalorder %s131_s1, %s199_s2 }
  0xcf   :  { %p137_p1 = pnand %p135_p0, %p132_p13 }
  0xd1   :  { %140 = shalt.err (!%p137_p1)
}
  0xd2   :  { %78 = dma.vmem_to_hbm [thread:$0]  %s73_s25, 256, %s199_s2, [#allocation4], %s146_s19, %s146_s19, %s147_s20  }
  0xd3   :  { %143 = dma.done.wait [#allocation4], 256  }
  0xd4   :  { %144 = vsyncadd [#allocation4], 4294967040 }
  0xd5   :  { %82 = vsyncpa [#allocation3], 1 }
  0xd6   :  { %83 = vsyncpa [#allocation4], 1 }

</bundles_post_ra>
